<compile_context>
chip_gen: v7x
topology: tpu7x:2x2x1
jax: 0.10.0
libtpu: 0.0.40
codegen_flags: <defaults>
</compile_context>

<pallas_src>
import functools

import numpy as np
import jax
import jax.numpy as jnp
from jax.experimental import pallas as pl
from jax.experimental.pallas import tpu as pltpu


def _round_up(a, b):
    return -(-a // b) * b


def adb_kernel(x_ref, xt_ref, w_ref, shift_ref, o_ref, xc_ref, xb_ref, *, k, wp):
    """Fused ADB tile.

    x_ref:     (1, Cin_p, TM)      main flattened-input chunk for this tile
    xt_ref:    (1, Cin_p, TB)      next TB flat elements (tap spill-over)
    w_ref:     (Cout, k*k*Cin_p)   BN-folded, tap-deduplicated weights
    shift_ref: (Cout, 1)           summed per-channel shift of all branches
    o_ref:     (1, Cout, TM)       output tile, spatial on lanes (lane-dense)
    xc_ref:    (Cin_p, TM+TB)      scratch: contiguous main+tail window
    xb_ref:    (k*k*Cin_p, TM)     scratch: fused matmul RHS
    """
    tm = x_ref.shape[2]
    cin = x_ref.shape[1]

    # Stitch main tile + tail into one contiguous window (two aligned stores,
    # replaces the value-level concatenate of v2).
    xc_ref[:, :tm] = x_ref[0]
    xc_ref[:, tm:] = xt_ref[0]

    # Build the fused RHS: ONE wide (unaligned) load per row shift a*Wp, then
    # the k column shifts b are cheap in-register lane shifts of that slab
    # (same XLU ops as pltpu.roll, unambiguous semantics), stored into xb with
    # sublane-aligned stores (cin is padded to the packing in the wrapper).
    for a in range(k):
        wide = xc_ref[:, a * wp:a * wp + tm + 128]          # (cin, tm+128)
        for b in range(k):
            t = a * k + b
            xb_ref[t * cin:(t + 1) * cin, :] = wide[:, b:b + tm]

    # One big-K MXU matmul replaces the three branches' 15 tiny matmuls; the
    # tap/branch accumulation happens inside the MXU (f32 accumulator).
    y = jnp.dot(w_ref[...], xb_ref[...], preferred_element_type=jnp.float32)
    o_ref[0] = jnp.maximum(y + shift_ref[...], 0.0).astype(o_ref.dtype)


def adb_forward(x_nchw, params, k, *, tm=4096, compute_dtype=jnp.bfloat16):
    N, Cin, H, W = x_nchw.shape
    Cout = params["ws"].shape[-1]
    P = k - 1
    Hp, Wp = H + 2 * P, W + 2 * P          # zero-padded input spatial dims
    Ho, Wo = H + P, W + P                  # all three branches share this output shape

    # Sublane packing of the compute dtype: pad Cin so every tap piece is a
    # whole native tile (keeps bf16 stores/loads aligned for any Cin).
    pack = 16 if jnp.dtype(compute_dtype).itemsize == 2 else 8
    Cin_p = _round_up(Cin, pack)

    # Fold conv bias + eval-mode BatchNorm into per-branch scale/shift.
    eps = 1e-5
    scales, shifts = {}, {}
    for br in ("s", "h", "v"):
        sc = params[f"gamma_{br}"] / jnp.sqrt(params[f"var_{br}"] + eps)
        sh = params[f"beta_{br}"] + (params[f"bias_{br}"] - params[f"mean_{br}"]) * sc
        scales[br], shifts[br] = sc, sh
    shift_total = (shifts["s"] + shifts["h"] + shifts["v"]).astype(jnp.float32)
    shift_total = shift_total.reshape(Cout, 1)

    # Gather form of the stride-1 transposed conv on the P-padded input:
    #   out[oy, ox] += xp[oy + (P - dh*i), ox + (P - dw*j)] @ W[i, j]
    # In flattened (width-Wp) coordinates each tap is a constant lane offset
    # d = a*Wp + b with a, b in [0, P].  h-branch taps (a=P) and v-branch taps
    # (b=P) coincide with s-branch taps, so group-by-offset and SUM the
    # BN-scale-folded weight columns: only k*k distinct taps remain.
    ws, wh, wv = params["ws"], params["wh"], params["wv"]
    cols = {}

    def _acc(off, col):
        cols[off] = cols[off] + col if off in cols else col

    for i in range(k):                      # s: kernel (k,k), dilation (1,1)
        for j in range(k):
            _acc((P - i) * Wp + (P - j), (ws[i, j] * scales["s"][None, :]).T)
    for j in range(k):                      # h: kernel (1,k), dilation (k,1)
        _acc(P * Wp + (P - j), (wh[0, j] * scales["h"][None, :]).T)
    for i in range(k):                      # v: kernel (k,1), dilation (1,k)
        _acc((P - i) * Wp + P, (wv[i, 0] * scales["v"][None, :]).T)

    # Column order must match the kernel's xb build: tap t = a*k + b.
    zpad = jnp.zeros((Cout, Cin_p - Cin), jnp.float32)
    w_cols = []
    for a in range(k):
        for b in range(k):
            col = cols[a * Wp + b]                                  # (Cout, Cin)
            if Cin_p > Cin:
                col = jnp.concatenate([col, zpad], axis=1)          # (Cout, Cin_p)
            w_cols.append(col)
    w_big = jnp.concatenate(w_cols, axis=1).astype(compute_dtype)   # (Cout, k*k*Cin_p)
    K = k * k * Cin_p

    # Tiling of the (width-padded) flattened output  m = oy*Wp + ox.
    TB = _round_up(P * Wp + 128, 128)      # tail slack: covers max row shift + slab width
    TM = _round_up(max(tm, TB), TB)        # main tile: multiple of TB (hence of 128)
    assert TB >= P * Wp + 128 and TM % TB == 0
    Mo = Ho * Wp                           # flattened output length (width-padded)
    n_mt = pl.cdiv(Mo, TM)
    Mpad = n_mt * TM
    L_need = Mpad + TB                     # flat input length incl. tail slack

    # ONE combined pad (spatial pad + channel pad + bottom rows for flat slack)
    # -> a single HBM pass over the input, fused with the dtype cast.
    extra_rows = _round_up(max(L_need - Hp * Wp, 0), Wp) // Wp
    xp = jnp.pad(x_nchw, ((0, 0), (0, Cin_p - Cin), (P, P + extra_rows), (P, P)))
    flat_len = (Hp + extra_rows) * Wp
    xf = xp.reshape(N, Cin_p, flat_len).astype(compute_dtype)

    out = pl.pallas_call(
        functools.partial(adb_kernel, k=k, wp=Wp),
        out_shape=jax.ShapeDtypeStruct((N, Cout, Mpad), jnp.float32),
        grid=(N, n_mt),
        in_specs=[
            # main chunk: flat elements [m*TM, (m+1)*TM)
            pl.BlockSpec((1, Cin_p, TM), lambda n, m: (n, 0, m)),
            # tail chunk: flat elements [(m+1)*TM, (m+1)*TM + TB)
            pl.BlockSpec((1, Cin_p, TB), lambda n, m: (n, 0, (m + 1) * (TM // TB))),
            pl.BlockSpec((Cout, K), lambda n, m: (0, 0)),
            pl.BlockSpec((Cout, 1), lambda n, m: (0, 0)),
        ],
        out_specs=pl.BlockSpec((1, Cout, TM), lambda n, m: (n, 0, m)),
        scratch_shapes=[
            pltpu.VMEM((Cin_p, TM + TB), compute_dtype),   # stitched input window
            pltpu.VMEM((K, TM), compute_dtype),            # fused matmul RHS
        ],
        compiler_params=pltpu.CompilerParams(
            dimension_semantics=("parallel", "parallel"),
            vmem_limit_bytes=32 * 1024 * 1024),
    )(xf, xf, w_big, shift_total)

    # Already NCHW: drop the padded tail and the Wp-Wo junk columns.
    # (One extra output-sized HBM pass; a consumer accepting the Wp-strided
    #  layout can skip it.)
    out = out[:, :, :Ho * Wp].reshape(N, Cout, Ho, Wp)[:, :, :, :Wo]
    return out


# ----------------------------- pure reference ------------------------------
def _conv_transpose_ref(x, w, bias, dil_h, dil_w, op_h, op_w):
    # x: (N, Cin, H, W); w: (kh, kw, Cin, Cout); stride=1, padding=0
    x = np.asarray(x, np.float32); w = np.asarray(w, np.float32)
    N, Cin, H, W = x.shape
    kh, kw, _, Cout = w.shape
    Ho = H + dil_h * (kh - 1) + op_h
    Wo = W + dil_w * (kw - 1) + op_w
    out = np.zeros((N, Cout, Ho, Wo), np.float32)
    for i in range(kh):
        for j in range(kw):
            c = np.einsum("nchw,cd->ndhw", x, w[i, j])
            out[:, :, i * dil_h:i * dil_h + H, j * dil_w:j * dil_w + W] += c
    return out + np.asarray(bias, np.float32)[None, :, None, None]


def _bn_ref(z, gamma, beta, mean, var, eps=1e-5):
    g, b = np.asarray(gamma), np.asarray(beta)
    m, v = np.asarray(mean), np.asarray(var)
    return (z - m[None, :, None, None]) / np.sqrt(v[None, :, None, None] + eps) \
        * g[None, :, None, None] + b[None, :, None, None]


def adb_ref(x_nchw, p, k):
    ys = _bn_ref(_conv_transpose_ref(x_nchw, p["ws"], p["bias_s"], 1, 1, 0, 0),
                 p["gamma_s"], p["beta_s"], p["mean_s"], p["var_s"])
    yh = _bn_ref(_conv_transpose_ref(x_nchw, p["wh"], p["bias_h"], k, 1, k - 1, 0),
                 p["gamma_h"], p["beta_h"], p["mean_h"], p["var_h"])
    yv = _bn_ref(_conv_transpose_ref(x_nchw, p["wv"], p["bias_v"], 1, k, 0, k - 1),
                 p["gamma_v"], p["beta_v"], p["mean_v"], p["var_v"])
    return np.maximum(ys + yh + yv, 0.0)


if __name__ == "__main__":
    in_channels, out_channels, k = 8, 16, 3
    N, H, W = 2, 16, 16

    keys = jax.random.split(jax.random.PRNGKey(0), 20)
    f32 = jnp.float32
    params = {
        "ws": 0.2 * jax.random.normal(keys[0], (k, k, in_channels, out_channels), f32),
        "wh": 0.2 * jax.random.normal(keys[1], (1, k, in_channels, out_channels), f32),
        "wv": 0.2 * jax.random.normal(keys[2], (k, 1, in_channels, out_channels), f32),
        "bias_s": 0.1 * jax.random.normal(keys[3], (out_channels,), f32),
        "bias_h": 0.1 * jax.random.normal(keys[4], (out_channels,), f32),
        "bias_v": 0.1 * jax.random.normal(keys[5], (out_channels,), f32),
        "gamma_s": jax.random.uniform(keys[6], (out_channels,), f32, 0.5, 1.5),
        "gamma_h": jax.random.uniform(keys[7], (out_channels,), f32, 0.5, 1.5),
        "gamma_v": jax.random.uniform(keys[8], (out_channels,), f32, 0.5, 1.5),
        "beta_s": 0.1 * jax.random.normal(keys[9], (out_channels,), f32),
        "beta_h": 0.1 * jax.random.normal(keys[10], (out_channels,), f32),
        "beta_v": 0.1 * jax.random.normal(keys[11], (out_channels,), f32),
        "mean_s": 0.1 * jax.random.normal(keys[12], (out_channels,), f32),
        "mean_h": 0.1 * jax.random.normal(keys[13], (out_channels,), f32),
        "mean_v": 0.1 * jax.random.normal(keys[14], (out_channels,), f32),
        "var_s": jax.random.uniform(keys[15], (out_channels,), f32, 0.5, 1.5),
        "var_h": jax.random.uniform(keys[16], (out_channels,), f32, 0.5, 1.5),
        "var_v": jax.random.uniform(keys[17], (out_channels,), f32, 0.5, 1.5),
    }
    x = 0.5 * jax.random.normal(keys[18], (N, in_channels, H, W), f32)

    ref = adb_ref(np.asarray(x), {kk: np.asarray(v) for kk, v in params.items()}, k)

    # 1) f32, small tile -> two spatial tiles, exercises the multi-tile grid
    #    and the tail-chunk index map.
    out32 = jax.block_until_ready(
        adb_forward(x, params, k, tm=256, compute_dtype=jnp.float32))
    assert out32.shape == ref.shape, (out32.shape, ref.shape)
    np.testing.assert_allclose(np.asarray(out32), ref, rtol=1e-2, atol=1e-2)

    # 2) default path: bf16 matmul inputs (f32 accumulate/epilogue), large lane
    #    tile, channel padding 8 -> 16 for bf16 sublane packing.
    out16 = jax.block_until_ready(adb_forward(x, params, k))
    assert out16.shape == ref.shape, (out16.shape, ref.shape)
    np.testing.assert_allclose(np.asarray(out16), ref, rtol=3e-2, atol=3e-2)

    print("KERNEL_OK")
</pallas_src>

<mosaic_0001>
module attributes {stable_mosaic.version = 11 : i64} {
  func.func @adb_kernel(%arg0: i32, %arg1: i32, %arg2: memref<1x8x256xf32, #tpu.memory_space<vmem>>, %arg3: memref<1x8x256xf32, #tpu.memory_space<vmem>>, %arg4: memref<16x72xf32, #tpu.memory_space<vmem>>, %arg5: memref<16x1xf32, #tpu.memory_space<vmem>>, %arg6: memref<1x16x256xf32, #tpu.memory_space<vmem>>, %arg7: memref<8x512xf32, #tpu.memory_space<vmem>>, %arg8: memref<72x256xf32, #tpu.memory_space<vmem>>) attributes {dimension_semantics = [#tpu.dimension_semantics<parallel>, #tpu.dimension_semantics<parallel>], iteration_bounds = array<i64: 2, 2>, scalar_prefetch = 0 : i64, scratch_operands = 2 : i64, tpu.core_type = #tpu.core_type<tc>, window_params = [{transform_indices = @transform_0, window_bounds = array<i64: 1, 8, 256>}, {transform_indices = @transform_1, window_bounds = array<i64: 1, 8, 256>}, {pipeline_mode = #tpu.pipeline_mode<synchronous>, transform_indices = @transform_2, window_bounds = array<i64: 16, 72>}, {pipeline_mode = #tpu.pipeline_mode<synchronous>, transform_indices = @transform_3, window_bounds = array<i64: 16, 1>}, {transform_indices = @transform_4, window_bounds = array<i64: 1, 16, 256>}]} {
    %c0 = arith.constant 0 : index
    %c0_0 = arith.constant 0 : index
    %c0_1 = arith.constant 0 : index
    %0 = vector.load %arg2[%c0, %c0_0, %c0_1] : memref<1x8x256xf32, #tpu.memory_space<vmem>>, vector<1x8x256xf32>
    %1 = vector.shape_cast %0 : vector<1x8x256xf32> to vector<8x256xf32>
    %c0_2 = arith.constant 0 : index
    %c0_3 = arith.constant 0 : index
    %2 = vector.load %arg7[%c0_2, %c0_3] : memref<8x512xf32, #tpu.memory_space<vmem>>, vector<8x256xf32>
    tpu.vector_store %arg7[%c0_2, %c0_3], %1 {strides = array<i32>} : memref<8x512xf32, #tpu.memory_space<vmem>>, vector<8x256xf32>,
    %c0_4 = arith.constant 0 : index
    %c0_5 = arith.constant 0 : index
    %c0_6 = arith.constant 0 : index
    %3 = vector.load %arg3[%c0_4, %c0_5, %c0_6] : memref<1x8x256xf32, #tpu.memory_space<vmem>>, vector<1x8x256xf32>
    %4 = vector.shape_cast %3 : vector<1x8x256xf32> to vector<8x256xf32>
    %c0_7 = arith.constant 0 : index
    %c256 = arith.constant 256 : index
    %5 = vector.load %arg7[%c0_7, %c256] : memref<8x512xf32, #tpu.memory_space<vmem>>, vector<8x256xf32>
    tpu.vector_store %arg7[%c0_7, %c256], %4 {strides = array<i32>} : memref<8x512xf32, #tpu.memory_space<vmem>>, vector<8x256xf32>,
    %c0_8 = arith.constant 0 : index
    %c0_9 = arith.constant 0 : index
    %6 = vector.load %arg7[%c0_8, %c0_9] : memref<8x512xf32, #tpu.memory_space<vmem>>, vector<8x384xf32>
    %7 = vector.extract_strided_slice %6 {offsets = [0, 0], sizes = [8, 256], strides = [1, 1]} : vector<8x384xf32> to vector<8x256xf32>
    %c0_10 = arith.constant 0 : index
    %c0_11 = arith.constant 0 : index
    %8 = vector.load %arg8[%c0_10, %c0_11] : memref<72x256xf32, #tpu.memory_space<vmem>>, vector<8x256xf32>
    tpu.vector_store %arg8[%c0_10, %c0_11], %7 {strides = array<i32>} : memref<72x256xf32, #tpu.memory_space<vmem>>, vector<8x256xf32>,
    %9 = vector.extract_strided_slice %6 {offsets = [0, 1], sizes = [8, 256], strides = [1, 1]} : vector<8x384xf32> to vector<8x256xf32>
    %c8 = arith.constant 8 : index
    %c0_12 = arith.constant 0 : index
    %10 = vector.load %arg8[%c8, %c0_12] : memref<72x256xf32, #tpu.memory_space<vmem>>, vector<8x256xf32>
    tpu.vector_store %arg8[%c8, %c0_12], %9 {strides = array<i32>} : memref<72x256xf32, #tpu.memory_space<vmem>>, vector<8x256xf32>,
    %11 = vector.extract_strided_slice %6 {offsets = [0, 2], sizes = [8, 256], strides = [1, 1]} : vector<8x384xf32> to vector<8x256xf32>
    %c16 = arith.constant 16 : index
    %c0_13 = arith.constant 0 : index
    %12 = vector.load %arg8[%c16, %c0_13] : memref<72x256xf32, #tpu.memory_space<vmem>>, vector<8x256xf32>
    tpu.vector_store %arg8[%c16, %c0_13], %11 {strides = array<i32>} : memref<72x256xf32, #tpu.memory_space<vmem>>, vector<8x256xf32>,
    %c0_14 = arith.constant 0 : index
    %c20 = arith.constant 20 : index
    %13 = vector.load %arg7[%c0_14, %c20] : memref<8x512xf32, #tpu.memory_space<vmem>>, vector<8x384xf32>
    %14 = vector.extract_strided_slice %13 {offsets = [0, 0], sizes = [8, 256], strides = [1, 1]} : vector<8x384xf32> to vector<8x256xf32>
    %c24 = arith.constant 24 : index
    %c0_15 = arith.constant 0 : index
    %15 = vector.load %arg8[%c24, %c0_15] : memref<72x256xf32, #tpu.memory_space<vmem>>, vector<8x256xf32>
    tpu.vector_store %arg8[%c24, %c0_15], %14 {strides = array<i32>} : memref<72x256xf32, #tpu.memory_space<vmem>>, vector<8x256xf32>,
    %16 = vector.extract_strided_slice %13 {offsets = [0, 1], sizes = [8, 256], strides = [1, 1]} : vector<8x384xf32> to vector<8x256xf32>
    %c32 = arith.constant 32 : index
    %c0_16 = arith.constant 0 : index
    %17 = vector.load %arg8[%c32, %c0_16] : memref<72x256xf32, #tpu.memory_space<vmem>>, vector<8x256xf32>
    tpu.vector_store %arg8[%c32, %c0_16], %16 {strides = array<i32>} : memref<72x256xf32, #tpu.memory_space<vmem>>, vector<8x256xf32>,
    %18 = vector.extract_strided_slice %13 {offsets = [0, 2], sizes = [8, 256], strides = [1, 1]} : vector<8x384xf32> to vector<8x256xf32>
    %c40 = arith.constant 40 : index
    %c0_17 = arith.constant 0 : index
    %19 = vector.load %arg8[%c40, %c0_17] : memref<72x256xf32, #tpu.memory_space<vmem>>, vector<8x256xf32>
    tpu.vector_store %arg8[%c40, %c0_17], %18 {strides = array<i32>} : memref<72x256xf32, #tpu.memory_space<vmem>>, vector<8x256xf32>,
    %c0_18 = arith.constant 0 : index
    %c40_19 = arith.constant 40 : index
    %20 = vector.load %arg7[%c0_18, %c40_19] : memref<8x512xf32, #tpu.memory_space<vmem>>, vector<8x384xf32>
    %21 = vector.extract_strided_slice %20 {offsets = [0, 0], sizes = [8, 256], strides = [1, 1]} : vector<8x384xf32> to vector<8x256xf32>
    %c48 = arith.constant 48 : index
    %c0_20 = arith.constant 0 : index
    %22 = vector.load %arg8[%c48, %c0_20] : memref<72x256xf32, #tpu.memory_space<vmem>>, vector<8x256xf32>
    tpu.vector_store %arg8[%c48, %c0_20], %21 {strides = array<i32>} : memref<72x256xf32, #tpu.memory_space<vmem>>, vector<8x256xf32>,
    %23 = vector.extract_strided_slice %20 {offsets = [0, 1], sizes = [8, 256], strides = [1, 1]} : vector<8x384xf32> to vector<8x256xf32>
    %c56 = arith.constant 56 : index
    %c0_21 = arith.constant 0 : index
    %24 = vector.load %arg8[%c56, %c0_21] : memref<72x256xf32, #tpu.memory_space<vmem>>, vector<8x256xf32>
    tpu.vector_store %arg8[%c56, %c0_21], %23 {strides = array<i32>} : memref<72x256xf32, #tpu.memory_space<vmem>>, vector<8x256xf32>,
    %25 = vector.extract_strided_slice %20 {offsets = [0, 2], sizes = [8, 256], strides = [1, 1]} : vector<8x384xf32> to vector<8x256xf32>
    %c64 = arith.constant 64 : index
    %c0_22 = arith.constant 0 : index
    %26 = vector.load %arg8[%c64, %c0_22] : memref<72x256xf32, #tpu.memory_space<vmem>>, vector<8x256xf32>
    tpu.vector_store %arg8[%c64, %c0_22], %25 {strides = array<i32>} : memref<72x256xf32, #tpu.memory_space<vmem>>, vector<8x256xf32>,
    %c0_23 = arith.constant 0 : index
    %c0_24 = arith.constant 0 : index
    %27 = vector.load %arg4[%c0_23, %c0_24] : memref<16x72xf32, #tpu.memory_space<vmem>>, vector<16x72xf32>
    %c0_25 = arith.constant 0 : index
    %c0_26 = arith.constant 0 : index
    %28 = vector.load %arg8[%c0_25, %c0_26] : memref<72x256xf32, #tpu.memory_space<vmem>>, vector<72x256xf32>
    %cst = arith.constant dense<0.000000e+00> : vector<16x256xf32>
    %29 = tpu.matmul %27, %28, %cst {dimension_numbers = #tpu.dot_dimension_numbers<[1], [0], [0], [1], [0, 0, 1, 1], [], []>} : vector<16x72xf32>, vector<72x256xf32>, vector<16x256xf32> -> vector<16x256xf32>
    %c0_27 = arith.constant 0 : index
    %c0_28 = arith.constant 0 : index
    %30 = vector.load %arg5[%c0_27, %c0_28] : memref<16x1xf32, #tpu.memory_space<vmem>>, vector<16x1xf32>
    %31 = vector.broadcast %30 : vector<16x1xf32> to vector<16x256xf32>
    %32 = arith.addf %29, %31 : vector<16x256xf32>
    %cst_29 = arith.constant 0.000000e+00 : f32
    %33 = vector.broadcast %cst_29 : f32 to vector<16x256xf32>
    %34 = arith.maximumf %32, %33 : vector<16x256xf32>
    %c0_30 = arith.constant 0 : index
    %c0_31 = arith.constant 0 : index
    %c0_32 = arith.constant 0 : index
    %35 = vector.load %arg6[%c0_30, %c0_31, %c0_32] : memref<1x16x256xf32, #tpu.memory_space<vmem>>, vector<1x16x256xf32>
    %36 = vector.shape_cast %35 : vector<1x16x256xf32> to vector<16x256xf32>
    %37 = vector.shape_cast %34 : vector<16x256xf32> to vector<1x16x256xf32>
    tpu.vector_store %arg6[%c0_30, %c0_31, %c0_32], %37 {strides = array<i32>} : memref<1x16x256xf32, #tpu.memory_space<vmem>>, vector<1x16x256xf32>,
    return
  }
  func.func @transform_0(%arg0: i32, %arg1: i32) -> (i32, i32, i32) {
    %c0_i32 = arith.constant 0 : i32
    %c0_i32_0 = arith.constant 0 : i32
    return %arg0, %c0_i32, %arg1 : i32, i32, i32
  }
  func.func @transform_1(%arg0: i32, %arg1: i32) -> (i32, i32, i32) {
    %c1_i32 = arith.constant 1 : i32
    %0 = arith.addi %arg1, %c1_i32 : i32
    %c1_i32_0 = arith.constant 1 : i32
    %1 = arith.muli %0, %c1_i32_0 : i32
    %c0_i32 = arith.constant 0 : i32
    %c0_i32_1 = arith.constant 0 : i32
    return %arg0, %c0_i32, %1 : i32, i32, i32
  }
  func.func @transform_2(%arg0: i32, %arg1: i32) -> (i32, i32) {
    %c0_i32 = arith.constant 0 : i32
    %c0_i32_0 = arith.constant 0 : i32
    %c0_i32_1 = arith.constant 0 : i32
    return %c0_i32, %c0_i32_0 : i32, i32
  }
  func.func @transform_3(%arg0: i32, %arg1: i32) -> (i32, i32) {
    %c0_i32 = arith.constant 0 : i32
    %c0_i32_0 = arith.constant 0 : i32
    %c0_i32_1 = arith.constant 0 : i32
    return %c0_i32, %c0_i32_0 : i32, i32
  }
  func.func @transform_4(%arg0: i32, %arg1: i32) -> (i32, i32, i32) {
    %c0_i32 = arith.constant 0 : i32
    %c0_i32_0 = arith.constant 0 : i32
    return %arg0, %c0_i32, %arg1 : i32, i32, i32
  }
}

</mosaic_0001>

<bundles_post_ra>
// kernel: tpu_custom_call.1
= control target key start
LH: loop header
LB: loop body
LE: loop exit
PB: predicated region body
PF: predicated region fallthrough
CT: control target
= control target key end

     0   :  { %s1403_s0 = inlined_call_operand.hbm [shape: f32[2,8,780], index: 0, kind: input, shape index: {}]   ;;  %s1404_s1 = inlined_call_operand.hbm [shape: f32[2,8,780], index: 1, kind: input, shape index: {}]   ;;  %s1405_s2 = inlined_call_operand.vmem [shape: f32[16,72], index: 2, kind: input, shape index: {}]   ;;  %s1406_s3 = inlined_call_operand.vmem [shape: f32[16,1], index: 3, kind: input, shape index: {}]   ;;  %s1407_s4 = inlined_call_operand.hbm [shape: f32[2,16,512], index: 4, kind: output, shape index: {}]  }
   0x1   :  { %1421 = sst [smem:[#allocation22_spill]] %s1405_s2 }
   0x2   :  { %1422 = sst [smem:[#allocation23_spill]] %s1407_s4 }
   0x3   :  { %9 = vsyncpa [#allocation5], 0 }
   0x4   :  { %11 = vsyncpa [#allocation5 + $0x1], 0 }
   0x5   :  { %12 = vsyncpa [#allocation8], 0 }
   0x6   :  { %14 = vsyncpa [#allocation8 + $0x1], 0 }
   0x7   :  { %15 = vsyncpa [#allocation6], 0 }
   0x8   :  { %17 = vsyncpa [#allocation6 + $0x1], 0  ;;  %s1129_s15 = smov 0   ;;  %s1131_s16 = smov 0  }
   0x9   :  { %s1133_s17 = smov 0   ;;  %s1135_s18 = smov 0  }
   0xa   :  { %s1137_s19 = smov 0   ;;  %s1139_s20 = smov 0  }
   0xb   :  { %s1141_s21 = smov 0   ;;  %s1143_s22 = smov 0  }
   0xc   :  { %s1145_s23 = smov 0   ;;  %s1147_s24 = smov 0  }
   0xd   :  { %s1149_s25 = smov 0  }
   0xe LB: > { %1423 = sst [smem:[#allocation13_spill]] %s1058_s18  ;;  %s1408_s26 = sadd.s32 4294967295, %s1086_s25   ;;  %s1086_s25 = sphi %s1149_s25, %s23_s25   ;;  %s1082_s24 = sphi %s1147_s24, %s1464_s24   ;;  %s1078_s23 = sphi %s1145_s23, %s1463_s23   ;;  %s1074_s22 = sphi %s1143_s22, %s1462_s22   ;;  %s1070_s21 = sphi %s1141_s21, %s1461_s21   ;;  %s1066_s20 = sphi %s1139_s20, %s1453_s20   ;;  %s1062_s19 = sphi %s1137_s19, %s1460_s19   ;;  %s1058_s18 = sphi %s1135_s18, %s1459_s18   ;;  %s1054_s17 = sphi %s1133_s17, %s1458_s17   ;;  %s1050_s16 = sphi %s1131_s16, %s1457_s16   ;;  %s1046_s15 = sphi %s1129_s15, %s1456_s15  }
   0xf   : > { %1424 = sst [smem:[#allocation14_spill]] %s1066_s20  ;;  %s32_s28 = sadd.s32 1, %s1078_s23 }
  0x10   : > { %1425 = sst [smem:[#allocation15_spill]] %s1074_s22  ;;  %s35_s29 = sadd.s32 1, %s1082_s24 }
  0x11   : > { %p33_p0 = scmp.ge.s32.totalorder %s32_s28, 2  ;;  %s44_s30 = sadd.s32 1, %s1066_s20 }
  0x12   : > { %p51_p1 = scmp.ne.s32.totalorder %s1066_s20, %s1062_s19  ;;  %p52_p2 = scmp.eq.s32.totalorder %s1086_s25, 0 }
  0x13   : > { %s1192_s5 = scalar_select %p33_p0, 0, %s32_s28  }
  0x14   : > { %s1466_s29 = smov (!%p33_p0, %s35_s29), %s1082_s24  ;;  %p1202_p3 = por %p52_p2, %p51_p1 }
  0x15   : > { %1426 = sst [smem:[#allocation16_spill]] %s1192_s5  ;;  %s40_s6 = ssub.s32 %s1078_s23, %s1192_s5 }
  0x16   : > { %p37_p4 = scmp.ge.s32.totalorder %s1466_s29, 2  ;;  %p1411_p5 = scmp.ne.s32.totalorder %s1062_s19, %s1058_s18 }
  0x17   : > { %p1210_p6 = scmp.eq.s32.totalorder %s1408_s26, 0  ;;  %s68_s9 = sadd.s32 1, %s1192_s5 }
  0x18   : > { %s1468_s29 = smov (%p37_p4, %s1466_s29), 0  ;;  %s70_s11 = ssub.s32 %s32_s28, %s68_s9 }
  0x19   : > { %1429 = sst [smem:[#allocation17_spill]] %s1468_s29  ;;  %p1222_p7 = por %p1210_p6, %p1411_p5 }
  0x1a   : > { %s39_s12 = ssub.s32 %s1082_s24, %s1468_s29  ;;  %s74_s13 = sadd.s32 1, %s1054_s17 }
  0x1b   : > { %s41_s14 = sor.u32 %s40_s6, %s39_s12  ;;  %s71_s27 = sor.u32 %s70_s11, %s39_s12 }
  0x1c   : > { %p42_p8 = scmp.eq.s32.totalorder %s41_s14, 0  ;;  %p72_p9 = scmp.eq.s32.totalorder %s71_s27, 0 }
  0x1d   : > { %p81_p10 = scmp.ne.s32.totalorder %s1054_s17, %s1050_s16  ;;  %p87_p11 = scmp.ne.s32.totalorder %s1050_s16, %s1046_s15 }
  0x1e   : > { %s1234_s26 = scalar_select %p42_p8, %s1066_s20, %s44_s30  }
  0x1f   : > { %s1237_s5 = scalar_select %p72_p9, %s1054_s17, %s74_s13  }
  0x20   : > { %1431 = sst [smem:[#allocation18_spill]] %s1234_s26  ;;  %p1241_p12 = por %p81_p10, %p52_p2 }
  0x21   : > { %1432 = sst [smem:[#allocation19_spill]] %s1237_s5  ;;  %p1247_p13 = por %p87_p11, %p1210_p6 }
  0x22   : > { %s1435_s6 = sadd.s32 4294967295, %s1086_s25   ;;  %s1436_s9 = sadd.s32 4294967294, %s1086_s25  }
  0x23   : > { %s1434_s28 = scalar_select %p1247_p13, 1, 0 }
  0x24   : > { %p155_p0 = scmp.eq.s32.totalorder %s1435_s6, 3  ;;  %p161_p4 = scmp.eq.s32.totalorder %s1436_s9, 3 }
  0x25   : > { %p1439_p8 = scmp.ne.s32.totalorder %s1062_s19, %s1058_s18  ;;  %p693_p2 = scmp.ge.s32.totalorder %s1086_s25, 4 }
  0x26   : > { %p1258_p5 = por %p155_p0, %p51_p1 }
  0x27   : > { %p1265_p9 = por %p161_p4, %p1439_p8  ;;  %183 = sbr.rel (%p693_p2) target bundleno = 105 (0x69), region = 24 }
  0x28   : > { %s1437_s15 = scalar_select %p1258_p5, 1, 0 }
  0x29   : > { %s1440_s27 = scalar_select %p1265_p9, 1, 0 }
  0x2a   : > { %1438 = sst [smem:[#allocation20_spill]] %s1437_s15 }
  0x2b   : > { %1441 = sst [smem:[#allocation21_spill]] %s1440_s27 }
  0x2e   : > { %186 = sbr.rel (!%p1202_p3) target bundleno = 75 (0x4b), region = 28  ;;  %s187_s30 = sand.u32 (%p1202_p3), 1, %s1066_s20  }
  0x2f   : > { %s695_s8 = sshll.u32 (%p1202_p3), %s1078_s23, 1  ;;  %s694_s11 = sshll.u32 (%p1202_p3), %s187_s30, 4 }
  0x30   : > { %s1274_s12 = scalar_lea.sflag (%p1202_p3), [#allocation5], %s187_s30  ;;  %s191_s13 = scalar_lea.vmem (%p1202_p3), [#allocation4], %s694_s11 }
  0x31   : > { %s749_s14 = smul.u32 (%p1202_p3), 7, %s1082_s24  ;;  %s207_s6 = sshll.u32 (%p1202_p3), %s191_s13, 4  ;;  %s208_s6 = int_to_ptr.vmem [resolvable:$true] %s207_s6 }
  0x32   : > { %s901_s20 = scalar_lea.hbm (%p1202_p3), %s1403_s0, 1792 }
  0x33   : > { %s202_s9 = sadd.s32 (%p1202_p3), %s749_s14, %s695_s8 }
  0x34   : > { %s698_s29 = sshll.u32 (%p1202_p3), %s202_s9, 7 }
  0x35   : > { %s204_s27 = scalar_lea.hbm %s1403_s0, %s698_s29 }
  0x36   : > { %s897_s7 = scalar_lea.hbm %s204_s27, 256  ;;  %p902_p3 = scmp.lt.u32.totalorder %s204_s27, %s1403_s0 }
  0x37   : > { %p898_p1 = scmp.ne.s32.totalorder %s204_s27, %s897_s7  ;;  %p903_p6 = scmp.lt.u32.totalorder %s901_s20, %s897_s7 }
  0x38   : > { %p905_p11 = scmp.lt.u32.totalorder %s897_s7, %s204_s27 }
  0x39   : > { %p904_p10 = por %p903_p6, %p902_p3 }
  0x3b   : > { %p906_p0 = por %p905_p11, %p904_p10 }
  0x3d   : > { %p907_p4 = pnand %p906_p0, %p898_p1 }
  0x3f   : > { %910 = shalt.err (!%p907_p4)
}
  0x40   : > { %s911_s30 = scalar_lea.vmem %s208_s6, 256  ;;  %s1088_s26 = smov [#allocation4]  }
  0x41   : > { %p912_p8 = scmp.ne.s32.totalorder %s208_s6, %s911_s30  ;;  %s915_s29 = sshll.u32 %s1088_s26, 4  ;;  %s916_s29 = int_to_ptr.vmem [resolvable:$false] %s915_s29 }
  0x42   : > { %s917_s5 = scalar_lea.vmem %s916_s29, 512  ;;  %p918_p2 = scmp.lt.s32.totalorder %s208_s6, %s916_s29 }
  0x43   : > { %p919_p9 = scmp.lt.s32.totalorder %s917_s5, %s911_s30 }
  0x45   : > { %p920_p5 = por %p919_p9, %p918_p2 }
  0x47   : > { %p921_p13 = pnand %p920_p5, %p912_p8 }
  0x49   : > { %924 = shalt.err (!%p921_p13)
}
  0x4a   : > { %210 = dma.hbm_to_vmem [thread:$0]  %s204_s27, 256, %s208_s6, %s1274_s12  }
  0x4b PF: > { %213 = sbr.rel (!%p1241_p12) target bundleno = 105 (0x69), region = 32  ;;  %s214_s2 = sand.u32 (%p1241_p12), 1, %s1054_s17  }
  0x4c   : > { %s721_s18 = sshll.u32 (%p1241_p12), %s1078_s23, 1  ;;  %s701_s20 = sshll.u32 (%p1241_p12), %s214_s2, 4 }
  0x4d   : > { %s1291_s22 = scalar_lea.sflag (%p1241_p12), [#allocation8], %s214_s2  ;;  %s218_s15 = scalar_lea.vmem (%p1241_p12), [#allocation7], %s701_s20 }
  0x4e   : > { %s615_s8 = smul.u32 (%p1241_p12), 7, %s1082_s24  ;;  %s235_s11 = sshll.u32 (%p1241_p12), %s218_s15, 4  ;;  %s236_s11 = int_to_ptr.vmem [resolvable:$true] %s235_s11 }
  0x4f   : > { %s929_s26 = scalar_lea.hbm (%p1241_p12), %s1404_s1, 1792 }
  0x50   : > { %s616_s13 = sadd.s32 (%p1241_p12), %s721_s18, %s615_s8 }
  0x51   : > { %s706_s14 = sshll.u32 (%p1241_p12), %s616_s13, 7 }
  0x52   : > { %s618_s12 = scalar_lea.hbm %s1404_s1, %s706_s14 }
  0x53   : > { %s619_s4 = scalar_lea.hbm %s618_s12, 256  ;;  %s1041_s6 = scalar_lea.hbm %s618_s12, 512 }
  0x54   : > { %p926_p5 = scmp.ne.s32.totalorder %s619_s4, %s1041_s6  ;;  %p930_p12 = scmp.lt.u32.totalorder %s619_s4, %s1404_s1 }
  0x55   : > { %p931_p13 = scmp.lt.u32.totalorder %s929_s26, %s1041_s6  ;;  %p933_p1 = scmp.lt.u32.totalorder %s1041_s6, %s619_s4 }
  0x57   : > { %p932_p9 = por %p931_p13, %p930_p12 }
  0x59   : > { %p934_p3 = por %p933_p1, %p932_p9 }
  0x5b   : > { %p935_p6 = pnand %p934_p3, %p926_p5 }
  0x5d   : > { %938 = shalt.err (!%p935_p6)
}
  0x5e   : > { %s939_s2 = scalar_lea.vmem %s236_s11, 256  ;;  %s1089_s18 = smov [#allocation7]  }
  0x5f   : > { %p940_p10 = scmp.ne.s32.totalorder %s236_s11, %s939_s2  ;;  %s943_s20 = sshll.u32 %s1089_s18, 4  ;;  %s944_s20 = int_to_ptr.vmem [resolvable:$false] %s943_s20 }
  0x60   : > { %s945_s15 = scalar_lea.vmem %s944_s20, 512  ;;  %p946_p11 = scmp.lt.s32.totalorder %s236_s11, %s944_s20 }
  0x61   : > { %p947_p0 = scmp.lt.s32.totalorder %s945_s15, %s939_s2 }
  0x63   : > { %p948_p4 = por %p947_p0, %p946_p11 }
  0x65   : > { %p949_p8 = pnand %p948_p4, %p940_p10 }
  0x67   : > { %952 = shalt.err (!%p949_p8)
}
  0x68   : > { %238 = dma.hbm_to_vmem [thread:$0]  %s619_s4, 256, %s236_s11, %s1291_s22  }
  0x69 PF: > { %p709_p2 = scmp.ge.s32.totalorder %s1086_s25, 1  ;;  %p240_p5 = scmp.lt.s32.totalorder %s1086_s25, 5 }
  0x6b   : > { %p241_p12 = pnand %p709_p2, %p240_p5 }
  0x6c   : > { %s1307_s8 = sand.u32 (!%p241_p12), 1, %s1062_s19  }
  0x6d   : > { %244 = sbr.rel (%p241_p12) target bundleno = 506 (0x1fa), region = 36  ;;  %s710_s13 = sshll.u32 (!%p241_p12), %s1307_s8, 4 }
  0x6e   : > { %s247_s14 = scalar_lea.sflag (!%p241_p12), [#allocation5], %s1307_s8  ;;  %s250_s9 = scalar_lea.vmem (!%p241_p12), [#allocation4], %s710_s13 }
  0x74   : > { %1028 = dma.done.wait (%p1222_p7), %s247_s14, 256  }
  0x75   : > { %1030 = vsyncadd (%p1222_p7), %s247_s14, 4294967040  ;;  %s255_s22 = sand.u32 1, %s1050_s16   ;;  %p1442_p13 = scmp.ne.s32.totalorder %s1434_s28, 0 }
  0x76   : > { %s711_s11 = sshll.u32 %s255_s22, 4  ;;  %s256_s27 = scalar_lea.sflag [#allocation8], %s255_s22 }
  0x77   : > { %s259_s12 = scalar_lea.vmem [#allocation7], %s711_s11 }
  0x78   : > { %1032 = dma.done.wait (%p1442_p13), %s256_s27, 256  }
  0x79   : > { %1034 = vsyncadd (%p1442_p13), %s256_s27, 4294967040  ;;  %v302_v0 = vld [vmem:[%s250_s9 + $0x8] sm:$0xff]  ;;  %v305_v1 = vld [vmem:[%s259_s12] sm:$0xff]  ;;  %s1090_s4 = smov 126   ;;  %s1091_s6 = smov 127   ;;  %v1097_v4 = vmov 0.0  }
  0x7a   : > { %v865_v2 = vpack.i.bf16 %v305_v1, %v302_v0  ;;  %v301_v3 = vld [vmem:[%s250_s9] sm:$0xff]  ;;  %s1092_s10 = smov 108   ;;  %s1093_s7 = smov 106   ;;  %536 = vmatprep.mubr.f32.mxu0 %v1097_v4  ;;  %542 = vmatprep.mubr.f32.mxu1 %v1097_v4  ;;  %v1098_v5 = vmov 0   ;;  %v454_v7 = vld [vmem:[%s1406_s3 + $0x8] sm:$0xff]  ;;  %vm323_vm0 = vcmask 1039360  }
  0x7b   : > { %s1094_s30 = smov 107   ;;  %s1095_s28 = smov 87   ;;  %896 = vset.pattern.permute.xlu0 %v1098_v5  ;;  %895 = vset.pattern.permute.xlu1 %v1098_v5  ;;  %v453_v6 = vld [vmem:[%s1406_s3] sm:$0xff]  ;;  %vm355_vm1 = vcmask 883712   ;;  %vm336_vm2 = vcmask 1031168   ;;  %vm381_vm3 = vcmask 867328  }
  0x7c   : > { %866 = vrot.lane.b32.xlu1 %v865_v2, %s1090_s4  ;;  %861 = vrot.lane.b32.xlu0 %v865_v2, %s1091_s6  ;;  %s1096_s26 = smov 88   ;;  %s1099_s29 = smov 86   ;;  %vm368_vm4 = vcmask 875520   ;;  %vm413_vm5 = vcmask 711680   ;;  %vm400_vm6 = vcmask 719872   ;;  %vm426_vm7 = vcmask 703488  }
  0x7d   : > { %s1443_s15 = sld [smem:[#allocation15_spill]]  ;;  %vm465_vm8 = vcmask 588800   ;;  %s712_s27 = sshll.u32 %s1307_s8, 5 }
  0x7e   : > { %s1444_s9 = sld [smem:[#allocation22_spill]]  ;;  %s716_s12 = sshll.u32 %s1070_s21, 1 }
  0x7f   : > { %s558_s2 = scalar_lea.sflag [#allocation6], %s1307_s8  ;;  %s1100_s20 = smov [#allocation9]  }
  0x80   : > { %871 = vrot.lane.b32.xlu1 %v865_v2, %s1092_s10  ;;  %317 = vrot.lane.b32.xlu0 %v301_v3, %s1091_s6 }
  0x84   : > { %349 = vrot.lane.b32.xlu1 %v301_v3, %s1092_s10  ;;  %330 = vrot.lane.b32.xlu0 %v301_v3, %s1090_s4  ;;  %v433_v62 = vld [vmem:[%s1444_s9] sm:$0xff]  ;;  %v434_v63 = vld [vmem:[%s1444_s9 + $0x8] sm:$0xff]  ;;  %s717_s4 = sshll.u32 %s1443_s15, 3  ;;  %s288_s10 = scalar_lea.vmem [#allocation9], %s712_s27 }
  0x85   : > { %s570_s6 = sadd.s32 %s717_s4, %s716_s12  ;;  %s959_s15 = sshll.u32 %s1100_s20, 4  ;;  %s960_s15 = int_to_ptr.vmem [resolvable:$false] %s959_s15 }
  0x86   : > { %s961_s13 = scalar_lea.vmem %s960_s15, 1024 }
  0x88   : > { %881 = vrot.lane.b32.xlu1 %v865_v2, %s1093_s7  ;;  %876 = vrot.lane.b32.xlu0 %v865_v2, %s1094_s30 }
  0x8c   : > { %375 = vrot.lane.b32.xlu1 %v301_v3, %s1093_s7  ;;  %362 = vrot.lane.b32.xlu0 %v301_v3, %s1094_s30  ;;  %s573_s7 = sshll.u32 %s288_s10, 4  ;;  %s718_s30 = sshll.u32 %s570_s6, 7  ;;  %s1335_s7 = int_to_ptr.vmem [resolvable:$true] %s573_s7 }
  0x8d   : > { %s955_s18 = scalar_lea.vmem %s1335_s7, 512  ;;  %p962_p6 = scmp.lt.s32.totalorder %s1335_s7, %s960_s15 }
  0x8e   : > { %p956_p7 = scmp.ne.s32.totalorder %s1335_s7, %s955_s18  ;;  %p963_p10 = scmp.lt.s32.totalorder %s961_s13, %s955_s18 }
  0x90   : > { %891 = vrot.lane.b32.xlu1 %v865_v2, %s1095_s28  ;;  %886 = vrot.lane.b32.xlu0 %v865_v2, %s1096_s26  ;;  %p964_p11 = por %p963_p10, %p962_p6 }
  0x94   : > { %407 = vrot.lane.b32.xlu1 %v301_v3, %s1095_s28  ;;  %394 = vrot.lane.b32.xlu0 %v301_v3, %s1096_s26  ;;  %s1445_s28 = sld [smem:[#allocation20_spill]] }
  0x98   : > { %424 = vrot.lane.b32.xlu1 %v305_v1, %s1099_s29  ;;  %422 = vrot.lane.b32.xlu0 %v302_v0, %s1099_s29 }
  0x9a   : > { %p1447_p9 = scmp.ne.s32.totalorder %s1445_s28, 0 }
  0x9c   : > { %420 = vrot.lane.b32.xlu0 %v301_v3, %s1099_s29  ;;  %457 = vperm.xlu1 %895, %v453_v6   ;;  %s1446_s29 = sld [smem:[#allocation23_spill]]  ;;  %p957_p1 = pnand %p956_p7, %p1447_p9 }
  0x9e   : > { %p958_p3 = pneg %p957_p1 }
  0xa0   : > { %462 = vperm.xlu0 %896, %v454_v7   ;;  %p965_p0 = pnand %p964_p11, %p958_p3 }
  0xa2   : > { %s1340_s5 = scalar_lea.hbm %s1446_s29, %s718_s30 }
  0xee   : > { %v867_v8 = vpop.permute.xlu1 %866  ;;  %v862_v9 = vpop.permute.xlu0 %861 }
  0xef   : > { %v864_v10 = vunpack.i.h.bf16 %v862_v9  ;;  %v863_v11 = vunpack.i.l.bf16 %v862_v9  ;;  %v869_v12 = vunpack.i.h.bf16 %v867_v8  ;;  %v868_v13 = vunpack.i.l.bf16 %v867_v8 }
  0xf1   : > { %v325_v14 = vsel %vm323_vm0, %v863_v11, %v864_v10  ;;  %v338_v22 = vsel %vm336_vm2, %v868_v13, %v869_v12 }
  0xf2   : > { %v872_v15 = vpop.permute.xlu1 %871  ;;  %v318_v16 = vpop.permute.xlu0 %317  ;;  %v723_v17 = vpack.c.bf16 %v325_v14, %v302_v0 }
  0xf3   : > { %v874_v18 = vunpack.i.h.bf16 %v872_v15  ;;  %v873_v19 = vunpack.i.l.bf16 %v872_v15  ;;  %v324_v20 = vsel %vm323_vm0, %v318_v16, %v863_v11 }
  0xf4   : > { %724 = vmatprep.subr.bf16.mxu0 %v723_v17  ;;  %739 = vmatprep.subr.bf16.mxu1 %v723_v17  ;;  %v725_v21 = vpack.c.bf16 %v324_v20, %v301_v3 }
  0xf5   : > { %v357_v23 = vsel %vm355_vm1, %v873_v19, %v874_v18 }
  0xf6   : > { %v350_v24 = vpop.permute.xlu1 %349  ;;  %726 = vmatpush1.bf16.msra.mxu0 %v725_v21  ;;  %744 = vmatpush1.bf16.msra.mxu1 %v725_v21  ;;  %v331_v25 = vpop.permute.xlu0 %330  ;;  %v727_v26 = vpack.c.bf16 %v357_v23, %v338_v22 }
  0xf7   : > { %v356_v27 = vsel %vm355_vm1, %v350_v24, %v873_v19  ;;  %v337_v28 = vsel %vm336_vm2, %v331_v25, %v868_v13 }
  0xf8   : > { %v729_v29 = vpack.c.bf16 %v356_v27, %v337_v28  ;;  %728 = vmatprep.subr.bf16.mxu0 %v727_v26  ;;  %740 = vmatprep.subr.bf16.mxu1 %v727_v26 }
  0xfa   : > { %v882_v30 = vpop.permute.xlu1 %881  ;;  %730 = vmatpush1.bf16.msra.mxu0 %v729_v29  ;;  %745 = vmatpush1.bf16.msra.mxu1 %v729_v29  ;;  %v877_v31 = vpop.permute.xlu0 %876 }
  0xfb   : > { %v884_v32 = vunpack.i.h.bf16 %v882_v30  ;;  %v883_v33 = vunpack.i.l.bf16 %v882_v30  ;;  %v879_v34 = vunpack.i.h.bf16 %v877_v31  ;;  %v878_v35 = vunpack.i.l.bf16 %v877_v31 }
  0xfd   : > { %v370_v36 = vsel %vm368_vm4, %v878_v35, %v879_v34  ;;  %v383_v37 = vsel %vm381_vm3, %v883_v33, %v884_v32 }
  0xfe   : > { %v376_v38 = vpop.permute.xlu1 %375  ;;  %v363_v39 = vpop.permute.xlu0 %362  ;;  %v731_v40 = vpack.c.bf16 %v383_v37, %v370_v36 }
  0xff   : > { %v382_v41 = vsel %vm381_vm3, %v376_v38, %v883_v33  ;;  %v369_v42 = vsel %vm368_vm4, %v363_v39, %v878_v35 }
 0x100   : > { %v733_v43 = vpack.c.bf16 %v382_v41, %v369_v42  ;;  %732 = vmatprep.subr.bf16.mxu0 %v731_v40  ;;  %741 = vmatprep.subr.bf16.mxu1 %v731_v40 }
 0x102   : > { %v892_v44 = vpop.permute.xlu1 %891  ;;  %v887_v45 = vpop.permute.xlu0 %886  ;;  %734 = vmatpush1.bf16.msra.mxu0 %v733_v43  ;;  %746 = vmatpush1.bf16.msra.mxu1 %v733_v43 }
 0x103   : > { %v894_v46 = vunpack.i.h.bf16 %v892_v44  ;;  %v893_v47 = vunpack.i.l.bf16 %v892_v44  ;;  %v889_v48 = vunpack.i.h.bf16 %v887_v45  ;;  %v888_v49 = vunpack.i.l.bf16 %v887_v45 }
 0x105   : > { %v402_v50 = vsel %vm400_vm6, %v888_v49, %v889_v48  ;;  %v415_v51 = vsel %vm413_vm5, %v893_v47, %v894_v46 }
 0x106   : > { %v408_v52 = vpop.permute.xlu1 %407  ;;  %v395_v53 = vpop.permute.xlu0 %394  ;;  %v735_v54 = vpack.c.bf16 %v415_v51, %v402_v50 }
 0x107   : > { %v414_v55 = vsel %vm413_vm5, %v408_v52, %v893_v47  ;;  %v401_v56 = vsel %vm400_vm6, %v395_v53, %v888_v49 }
 0x108   : > { %v737_v57 = vpack.c.bf16 %v414_v55, %v401_v56  ;;  %736 = vmatprep.subr.bf16.mxu0 %v735_v54  ;;  %742 = vmatprep.subr.bf16.mxu1 %v735_v54 }
 0x10a   : > { %v425_v58 = vpop.permute.xlu1 %424  ;;  %v423_v59 = vpop.permute.xlu0 %422  ;;  %738 = vmatpush1.bf16.msra.mxu0 %v737_v57  ;;  %747 = vmatpush1.bf16.msra.mxu1 %v737_v57 }
 0x10b   : > { %v428_v60 = vsel %vm426_vm7, %v423_v59, %v425_v58 }
 0x10c   : > { %488 = vmatprep.subr.mxu0 %v428_v60  ;;  %743 = vmatprep.subr.mxu1 %v428_v60 }
 0x10e   : > { %v421_v61 = vpop.permute.xlu0 %420 }
 0x10f   : > { %v427_v0 = vsel %vm426_vm7, %v421_v61, %v423_v59 }
 0x110   : > { %489 = vmatpush1.msra.mxu0 %v427_v0  ;;  %748 = vmatpush1.msra.mxu1 %v427_v0 }
 0x111   : > { %713 = vmatmul.mubr.msk.f32.vlgmr.msra.gmra.mrb[0].mxu0 %vm465_vm8, %v433_v62  ;;  %714 = vmatmul.mubr.msk.f32.vlgmr.msra.gmra.mrb[0].mxu1 %vm465_vm8, %v434_v63 }
 0x11b   : > { %v458_v1 = vpop.permute.xlu1 %457 }
 0x11f   : > { %v463_v2 = vpop.permute.xlu0 %462 }
 0x1e4   : > { %v538_v3 = vpop.f32.mrb[0].mxu0  ;;  %v544_v4 = vpop.f32.mrb[0].mxu1 }
 0x1e5   : > { %v539_v5 = vadd.f32 %v538_v3, %v458_v1  ;;  %v545_v6 = vadd.f32 %v544_v4, %v463_v2  ;;  %v540_v7 = vpop.f32.mrb[1].mxu0  ;;  %v546_v8 = vpop.f32.mrb[1].mxu1 }
 0x1e6   : > { %v541_v9 = vadd.f32 %v540_v7, %v458_v1  ;;  %v547_v10 = vadd.f32 %v546_v8, %v463_v2 }
 0x1e7   : > { %v549_v11 = vmax.f32 %v539_v5, 0.0  ;;  %v551_v12 = vmax.f32 %v545_v6, 0.0 }
 0x1e8   : > { %v550_v13 = vmax.f32 %v541_v9, 0.0  ;;  %v552_v14 = vmax.f32 %v547_v10, 0.0 }
 0x1e9   : > { %553 = vst [vmem:[%s288_s10] sm:$0xff] %v549_v11  ;;  %555 = vst [vmem:[%s288_s10 + $0x10] sm:$0xff] %v551_v12 }
 0x1ea   : > { %554 = vst [vmem:[%s288_s10 + $0x8] sm:$0xff] %v550_v13  ;;  %556 = vst [vmem:[%s288_s10 + $0x18] sm:$0xff] %v552_v14 }
 0x1eb   : > { %968 = shalt.err (!%p965_p0)
}
 0x1ec   : > { %s969_s14 = scalar_lea.hbm %s1340_s5, 512  ;;  %s973_s27 = scalar_lea.hbm %s1446_s29, 2048 }
 0x1ed   : > { %p970_p4 = scmp.ne.s32.totalorder %s1340_s5, %s969_s14  ;;  %p974_p5 = scmp.lt.u32.totalorder %s1340_s5, %s1446_s29 }
 0x1ee   : > { %p975_p12 = scmp.lt.u32.totalorder %s973_s27, %s969_s14  ;;  %p977_p7 = scmp.lt.u32.totalorder %s969_s14, %s1340_s5 }
 0x1ef   : > { %p971_p8 = pnand %p970_p4, %p1447_p9 }
 0x1f0   : > { %p976_p13 = por %p975_p12, %p974_p5 }
 0x1f1   : > { %p972_p2 = pneg %p971_p8 }
 0x1f2   : > { %p978_p1 = por %p977_p7, %p976_p13 }
 0x1f4   : > { %p979_p3 = pnand %p978_p1, %p972_p2 }
 0x1f6   : > { %982 = shalt.err (!%p979_p3)
}
 0x1f7   : > { %s1101_s6 = smov 256   ;;  %s1102_s10 = smov 512  }
 0x1f8   : > { %s1103_s30 = smov 16  }
 0x1f9   : > { %752 = dma.vmem_to_hbm [thread:$0]  (%p1447_p9), %s1335_s7, 512, %s1340_s5, %s558_s2, %s1101_s6, %s1102_s10, %s1103_s30  }
 0x1fa PF: > { %s1448_s21 = sld [smem:[#allocation13_spill]]  ;;  %s1449_s26 = sld [smem:[#allocation21_spill]] }
 0x1fb   : > { %p758_p6 = scmp.ge.s32.totalorder %s1086_s25, 2 }
 0x200   : > { %s588_s18 = sand.u32 1, %s1448_s21   ;;  %p1450_p10 = scmp.ne.s32.totalorder %s1449_s26, 0 }
 0x201   : > { %s589_s20 = scalar_lea.sflag [#allocation6], %s588_s18 }
 0x202   : > { %p755_p11 = pnand %p758_p6, %p1450_p10 }
 0x204   : > { %1036 = dma.done.wait (!%p755_p11), %s589_s20, 512  }
 0x205   : > { %1038 = vsyncadd (!%p755_p11), %s589_s20, 4294966784  ;;  %s23_s25 = sadd.s32 1, %s1086_s25   ;;  %s1451_s13 = sld [smem:[#allocation19_spill]] }
 0x206   : > { %p20_p0 = scmp.ge.s32.totalorder %s23_s25, 6   ;;  %s1452_s8 = sld [smem:[#allocation14_spill]] }
 0x207   : > { %s1453_s20 = sld [smem:[#allocation18_spill]]  ;;  %s1454_s7 = sld [smem:[#allocation16_spill]] }
 0x208   : > { %s1455_s28 = sld [smem:[#allocation17_spill]]  ;;  %s1456_s15 = smov %s1050_s16 }
 0x209   : > { %s1457_s16 = smov %s1054_s17  ;;  %s1459_s18 = smov %s1062_s19 }
 0x20a   : > { %s1461_s21 = smov %s1078_s23  ;;  %s1462_s22 = smov %s1082_s24 }
 0x20b   : > { %s1458_s17 = smov %s1451_s13  ;;  %22 = sbr.rel (!%p20_p0) target bundleno = 14 (0xe), region = 94 }
 0x20c   : > { %s1460_s19 = smov %s1452_s8 }
 0x20d   : > { %s1463_s23 = smov %s1454_s7 }
 0x20e   : > { %s1464_s24 = smov %s1455_s28 }
 0x212   :  { %594 = vsyncpa [#allocation5], 1 }
 0x213   :  { %596 = vsyncpa [#allocation5 + $0x1], 1 }
 0x214   :  { %597 = vsyncpa [#allocation8], 1 }
 0x215   :  { %599 = vsyncpa [#allocation8 + $0x1], 1 }
 0x216   :  { %600 = vsyncpa [#allocation6], 1 }
 0x217   :  { %602 = vsyncpa [#allocation6 + $0x1], 1 }

</bundles_post_ra>
